<compile_context>
chip_gen: v5e
topology: v5e:2x2
jax: 0.10.0
libtpu: 0.0.40
codegen_flags: <defaults>
</compile_context>

<pallas_src>
import jax
import jax.numpy as jnp
from jax.experimental import pallas as pl
from jax.experimental.pallas import tpu as pltpu


def mlp_g_kernel(x_ref, w1_ref, w23_ref, b123_ref, w4_ref, b4_ref, o_ref):
    cdt = w1_ref.dtype  # MXU operand dtype (bf16); accumulation stays f32.

    # In-kernel f32 -> bf16 cast of the activations (free VPU slot).
    x = x_ref[...].astype(cdt)

    # Layer 1: Linear(nz -> ngf) + ReLU
    h = jnp.dot(x, w1_ref[...], preferred_element_type=jnp.float32)
    h = jnp.maximum(h + b123_ref[0:1, :], 0.0)
    # Layer 2: Linear(ngf -> ngf) + ReLU   (w2 == w23[0])
    h = jnp.dot(h.astype(cdt), w23_ref[0], preferred_element_type=jnp.float32)
    h = jnp.maximum(h + b123_ref[1:2, :], 0.0)
    # Layer 3: Linear(ngf -> ngf) + ReLU   (w3 == w23[1])
    h = jnp.dot(h.astype(cdt), w23_ref[1], preferred_element_type=jnp.float32)
    h = jnp.maximum(h + b123_ref[2:3, :], 0.0)
    # Layer 4: Linear(ngf -> nc*isize*isize), no activation
    out = jnp.dot(h.astype(cdt), w4_ref[...], preferred_element_type=jnp.float32)
    o_ref[...] = (out + b4_ref[...]).astype(o_ref.dtype)


def prepare_params(params, compute_dtype=jnp.bfloat16):
    """One-time conversion of PyTorch-layout params -> kernel-ready operands.

    params: [(w1,b1),(w2,b2),(w3,b3),(w4,b4)] with nn.Linear shapes
            weight (out, in), bias (out,), all f32.
    Returns (w1t, w23, b123, w4t, b4r):
      w1t  : (nz, ngf)        bf16
      w23  : (2, ngf, ngf)    bf16   (stacked, transposed w2 / w3)
      b123 : (3, ngf)         f32    (stacked b1 / b2 / b3)
      w4t  : (ngf, out_dim)   bf16
      b4r  : (1, out_dim)     f32
    Cache the result (e.g. store your generator params in this form) so the
    transpose/cast cost is paid once, not per forward call.
    """
    (w1, b1), (w2, b2), (w3, b3), (w4, b4) = params
    w1t = jnp.asarray(w1).T.astype(compute_dtype)
    w23 = jnp.stack([jnp.asarray(w2).T, jnp.asarray(w3).T]).astype(compute_dtype)
    w4t = jnp.asarray(w4).T.astype(compute_dtype)
    b123 = jnp.stack([jnp.asarray(b1), jnp.asarray(b2), jnp.asarray(b3)]).astype(jnp.float32)
    b4r = jnp.asarray(b4).astype(jnp.float32).reshape(1, -1)
    return (w1t, w23, b123, w4t, b4r)


def _round_up(x, m):
    return ((x + m - 1) // m) * m


def _choose_row_tile(B, block_b):
    """Pick the batch row-tile TB.

    * B <= 16          -> single fused step (pure per-call-overhead regime).
    * 16 < B <= 2*TBmax-> split into >= 2 grid steps so a 2-TC chip (v7x) can
                          shard the 'parallel' batch axis across both cores.
    * larger B         -> TB = block_b (software-pipelined multi-step grid).
    """
    if B <= 16:
        return B
    if B <= 2 * block_b:
        return min(block_b, _round_up(pl.cdiv(B, 2), 8))
    return block_b


def mlp_g_forward(x, prepared_params, nc, isize, *, block_b=256,
                  out_dtype=jnp.float32):
    """x: (B, nz) or (B, nz, 1, 1), f32. Returns (B, nc, isize, isize) in out_dtype."""
    B = x.shape[0]
    x2d = x.reshape(B, -1).astype(jnp.float32)   # matches input.view(B, nz)
    nz = x2d.shape[1]

    w1t, w23, b123, w4t, b4r = prepared_params
    ngf = w1t.shape[1]
    out_dim = w4t.shape[1]
    assert out_dim == nc * isize * isize

    # Cap the row tile so the double-buffered f32 output tile (~2*TB*out_dim*4 B)
    # stays inside v5e's 16 MiB default scoped-VMEM limit (TB=1024 -> ~8.4 MiB).
    block_b = min(block_b, 1024)
    TB = _choose_row_tile(B, block_b)
    grid = (pl.cdiv(B, TB),)

    resident = lambda a: pl.BlockSpec(a.shape, lambda i, _nd=a.ndim: (0,) * _nd)

    out_bytes = jnp.dtype(out_dtype).itemsize
    flops = 2 * B * (nz * ngf + ngf * ngf + ngf * ngf + ngf * out_dim)
    bytes_accessed = (
        2 * (nz * ngf + 2 * ngf * ngf + ngf * out_dim)   # bf16 weights
        + 4 * (3 * ngf + out_dim)                        # f32 biases
        + 4 * B * nz                                     # f32 input
        + out_bytes * B * out_dim)                       # output
    cost = pl.CostEstimate(flops=flops, transcendentals=0,
                           bytes_accessed=bytes_accessed)

    out2d = pl.pallas_call(
        mlp_g_kernel,
        out_shape=jax.ShapeDtypeStruct((B, out_dim), out_dtype),
        grid=grid,
        in_specs=[pl.BlockSpec((TB, nz), lambda i: (i, 0)),
                  resident(w1t), resident(w23), resident(b123),
                  resident(w4t), resident(b4r)],
        out_specs=pl.BlockSpec((TB, out_dim), lambda i: (i, 0)),
        compiler_params=pltpu.CompilerParams(
            dimension_semantics=("parallel",)),
        cost_estimate=cost,
    )(x2d, w1t, w23, b123, w4t, b4r)

    return out2d.reshape(B, nc, isize, isize)   # matches out.view(B, nc, isize, isize)


def init_params(key, nz, ngf, nc, isize):
    """Deterministic init with PyTorch nn.Linear shapes: weight (out, in), bias (out,)."""
    dims = [(ngf, nz), (ngf, ngf), (ngf, ngf), (nc * isize * isize, ngf)]
    params = []
    for (out_f, in_f) in dims:
        key, kw, kb = jax.random.split(key, 3)
        bound = 1.0 / (in_f ** 0.5)
        w = jax.random.uniform(kw, (out_f, in_f), jnp.float32, -bound, bound)
        b = jax.random.uniform(kb, (out_f,), jnp.float32, -bound, bound)
        params.append((w, b))
    return params


def reference_forward(x, params, nc, isize, compute_dtype=jnp.float32):
    B = x.shape[0]
    h = x.reshape(B, -1)
    n = len(params)
    for i, (w, b) in enumerate(params):
        h = jnp.dot(h.astype(compute_dtype), w.T.astype(compute_dtype),
                    preferred_element_type=jnp.float32) + b
        if i < n - 1:
            h = jnp.maximum(h, 0.0)
    return h.reshape(B, nc, isize, isize)


if __name__ == "__main__":
    # Small shapes consistent with the module: isize=16, nz=8, nc=4, ngf=32, batch=2.
    isize, nz, nc, ngf = 16, 8, 4, 32
    B = 2

    key = jax.random.PRNGKey(0)
    kx, kp, kx2 = jax.random.split(key, 3)
    params = init_params(kp, nz, ngf, nc, isize)
    prepared = prepare_params(params)            # one-time transpose + bf16 cast

    # GAN generator latent is typically (B, nz, 1, 1); forward views it to (B, nz).
    x = jax.random.normal(kx, (B, nz, 1, 1), jnp.float32)

    out = jax.block_until_ready(mlp_g_forward(x, prepared, nc, isize))
    assert out.shape == (B, nc, isize, isize), out.shape
    assert out.dtype == jnp.float32

    # Tight check vs a reference using the same bf16 MXU operands / f32 accumulation.
    ref_bf16 = reference_forward(x, params, nc, isize, compute_dtype=jnp.bfloat16)
    assert jnp.allclose(out, ref_bf16, atol=1e-3, rtol=1e-3), "mismatch vs bf16 reference"
    # Looser sanity check vs the pure-f32 PyTorch-equivalent reference.
    ref_f32 = reference_forward(x, params, nc, isize, compute_dtype=jnp.float32)
    assert jnp.allclose(out, ref_f32, atol=3e-2, rtol=3e-2), "mismatch vs f32 reference"

    # Exercise the multi-step (2-TC-friendly) tiled path: B=512, TB=256 -> 2 grid steps.
    B_big = 512
    x_big = jax.random.normal(kx2, (B_big, nz, 1, 1), jnp.float32)
    out_big = jax.block_until_ready(mlp_g_forward(x_big, prepared, nc, isize))
    ref_big = reference_forward(x_big, params, nc, isize, compute_dtype=jnp.bfloat16)
    assert out_big.shape == (B_big, nc, isize, isize)
    assert jnp.allclose(out_big, ref_big, atol=1e-3, rtol=1e-3), "mismatch (tiled path)"

    # Optional bf16-output path (halves the dominant HBM store at large B).
    out_bf16 = jax.block_until_ready(
        mlp_g_forward(x_big, prepared, nc, isize, out_dtype=jnp.bfloat16))
    assert out_bf16.dtype == jnp.bfloat16
    assert jnp.allclose(out_bf16.astype(jnp.float32), ref_big, atol=2e-2, rtol=2e-2), \
        "mismatch (bf16-output path)"

    print("KERNEL_OK")
</pallas_src>

<mosaic_0001>
module attributes {stable_mosaic.version = 11 : i64} {
  func.func @mlp_g_kernel(%arg0: i32, %arg1: memref<2x8xf32, #tpu.memory_space<vmem>>, %arg2: memref<8x32xbf16, #tpu.memory_space<vmem>>, %arg3: memref<2x32x32xbf16, #tpu.memory_space<vmem>>, %arg4: memref<3x32xf32, #tpu.memory_space<vmem>>, %arg5: memref<32x1024xbf16, #tpu.memory_space<vmem>>, %arg6: memref<1x1024xf32, #tpu.memory_space<vmem>>, %arg7: memref<2x1024xf32, #tpu.memory_space<vmem>>) attributes {dimension_semantics = [#tpu.dimension_semantics<parallel>], iteration_bounds = array<i64: 1>, scalar_prefetch = 0 : i64, scratch_operands = 0 : i64, tpu.core_type = #tpu.core_type<tc>, window_params = [{transform_indices = @transform_0, window_bounds = array<i64: 2, 8>}, {pipeline_mode = #tpu.pipeline_mode<synchronous>, transform_indices = @transform_1, window_bounds = array<i64: 8, 32>}, {pipeline_mode = #tpu.pipeline_mode<synchronous>, transform_indices = @transform_2, window_bounds = array<i64: 2, 32, 32>}, {pipeline_mode = #tpu.pipeline_mode<synchronous>, transform_indices = @transform_3, window_bounds = array<i64: 3, 32>}, {pipeline_mode = #tpu.pipeline_mode<synchronous>, transform_indices = @transform_4, window_bounds = array<i64: 32, 1024>}, {pipeline_mode = #tpu.pipeline_mode<synchronous>, transform_indices = @transform_5, window_bounds = array<i64: 1, 1024>}, {transform_indices = @transform_6, window_bounds = array<i64: 2, 1024>}]} {
    %c0 = arith.constant 0 : index
    %c0_0 = arith.constant 0 : index
    %0 = vector.load %arg1[%c0, %c0_0] : memref<2x8xf32, #tpu.memory_space<vmem>>, vector<2x8xf32>
    %1 = arith.truncf %0 : vector<2x8xf32> to vector<2x8xbf16>
    %c0_1 = arith.constant 0 : index
    %c0_2 = arith.constant 0 : index
    %2 = vector.load %arg2[%c0_1, %c0_2] : memref<8x32xbf16, #tpu.memory_space<vmem>>, vector<8x32xbf16>
    %cst = arith.constant dense<0.000000e+00> : vector<2x32xf32>
    %3 = tpu.matmul %1, %2, %cst {dimension_numbers = #tpu.dot_dimension_numbers<[1], [0], [0], [1], [0, 0, 1, 1], [], []>} : vector<2x8xbf16>, vector<8x32xbf16>, vector<2x32xf32> -> vector<2x32xf32>
    %c0_3 = arith.constant 0 : index
    %c0_4 = arith.constant 0 : index
    %4 = vector.load %arg4[%c0_3, %c0_4] : memref<3x32xf32, #tpu.memory_space<vmem>>, vector<1x32xf32>
    %5 = vector.broadcast %4 : vector<1x32xf32> to vector<2x32xf32>
    %6 = arith.addf %3, %5 : vector<2x32xf32>
    %cst_5 = arith.constant 0.000000e+00 : f32
    %7 = vector.broadcast %cst_5 : f32 to vector<2x32xf32>
    %8 = arith.maximumf %6, %7 : vector<2x32xf32>
    %9 = arith.truncf %8 : vector<2x32xf32> to vector<2x32xbf16>
    %c0_6 = arith.constant 0 : index
    %c0_7 = arith.constant 0 : index
    %c0_8 = arith.constant 0 : index
    %10 = vector.load %arg3[%c0_6, %c0_7, %c0_8] : memref<2x32x32xbf16, #tpu.memory_space<vmem>>, vector<1x32x32xbf16>
    %11 = vector.shape_cast %10 : vector<1x32x32xbf16> to vector<32x32xbf16>
    %cst_9 = arith.constant dense<0.000000e+00> : vector<2x32xf32>
    %12 = tpu.matmul %9, %11, %cst_9 {dimension_numbers = #tpu.dot_dimension_numbers<[1], [0], [0], [1], [0, 0, 1, 1], [], []>} : vector<2x32xbf16>, vector<32x32xbf16>, vector<2x32xf32> -> vector<2x32xf32>
    %c1 = arith.constant 1 : index
    %c0_10 = arith.constant 0 : index
    %13 = vector.load %arg4[%c1, %c0_10] : memref<3x32xf32, #tpu.memory_space<vmem>>, vector<1x32xf32>
    %14 = vector.broadcast %13 : vector<1x32xf32> to vector<2x32xf32>
    %15 = arith.addf %12, %14 : vector<2x32xf32>
    %cst_11 = arith.constant 0.000000e+00 : f32
    %16 = vector.broadcast %cst_11 : f32 to vector<2x32xf32>
    %17 = arith.maximumf %15, %16 : vector<2x32xf32>
    %18 = arith.truncf %17 : vector<2x32xf32> to vector<2x32xbf16>
    %c1_12 = arith.constant 1 : index
    %c0_13 = arith.constant 0 : index
    %c0_14 = arith.constant 0 : index
    %19 = vector.load %arg3[%c1_12, %c0_13, %c0_14] : memref<2x32x32xbf16, #tpu.memory_space<vmem>>, vector<1x32x32xbf16>
    %20 = vector.shape_cast %19 : vector<1x32x32xbf16> to vector<32x32xbf16>
    %cst_15 = arith.constant dense<0.000000e+00> : vector<2x32xf32>
    %21 = tpu.matmul %18, %20, %cst_15 {dimension_numbers = #tpu.dot_dimension_numbers<[1], [0], [0], [1], [0, 0, 1, 1], [], []>} : vector<2x32xbf16>, vector<32x32xbf16>, vector<2x32xf32> -> vector<2x32xf32>
    %c2 = arith.constant 2 : index
    %c0_16 = arith.constant 0 : index
    %22 = vector.load %arg4[%c2, %c0_16] : memref<3x32xf32, #tpu.memory_space<vmem>>, vector<1x32xf32>
    %23 = vector.broadcast %22 : vector<1x32xf32> to vector<2x32xf32>
    %24 = arith.addf %21, %23 : vector<2x32xf32>
    %cst_17 = arith.constant 0.000000e+00 : f32
    %25 = vector.broadcast %cst_17 : f32 to vector<2x32xf32>
    %26 = arith.maximumf %24, %25 : vector<2x32xf32>
    %27 = arith.truncf %26 : vector<2x32xf32> to vector<2x32xbf16>
    %c0_18 = arith.constant 0 : index
    %c0_19 = arith.constant 0 : index
    %28 = vector.load %arg5[%c0_18, %c0_19] : memref<32x1024xbf16, #tpu.memory_space<vmem>>, vector<32x1024xbf16>
    %cst_20 = arith.constant dense<0.000000e+00> : vector<2x1024xf32>
    %29 = tpu.matmul %27, %28, %cst_20 {dimension_numbers = #tpu.dot_dimension_numbers<[1], [0], [0], [1], [0, 0, 1, 1], [], []>} : vector<2x32xbf16>, vector<32x1024xbf16>, vector<2x1024xf32> -> vector<2x1024xf32>
    %c0_21 = arith.constant 0 : index
    %c0_22 = arith.constant 0 : index
    %30 = vector.load %arg6[%c0_21, %c0_22] : memref<1x1024xf32, #tpu.memory_space<vmem>>, vector<1x1024xf32>
    %31 = vector.broadcast %30 : vector<1x1024xf32> to vector<2x1024xf32>
    %32 = arith.addf %29, %31 : vector<2x1024xf32>
    %c0_23 = arith.constant 0 : index
    %c0_24 = arith.constant 0 : index
    %33 = vector.load %arg7[%c0_23, %c0_24] : memref<2x1024xf32, #tpu.memory_space<vmem>>, vector<2x1024xf32>
    tpu.vector_store %arg7[%c0_23, %c0_24], %32 {strides = array<i32>} : memref<2x1024xf32, #tpu.memory_space<vmem>>, vector<2x1024xf32>,
    return
  }
  func.func @transform_0(%arg0: i32) -> (i32, i32) {
    %c0_i32 = arith.constant 0 : i32
    %c0_i32_0 = arith.constant 0 : i32
    return %arg0, %c0_i32 : i32, i32
  }
  func.func @transform_1(%arg0: i32) -> (i32, i32) {
    %c0_i32 = arith.constant 0 : i32
    %c0_i32_0 = arith.constant 0 : i32
    %c0_i32_1 = arith.constant 0 : i32
    return %c0_i32, %c0_i32_0 : i32, i32
  }
  func.func @transform_2(%arg0: i32) -> (i32, i32, i32) {
    %c0_i32 = arith.constant 0 : i32
    %c0_i32_0 = arith.constant 0 : i32
    %c0_i32_1 = arith.constant 0 : i32
    %c0_i32_2 = arith.constant 0 : i32
    return %c0_i32, %c0_i32_0, %c0_i32_1 : i32, i32, i32
  }
  func.func @transform_3(%arg0: i32) -> (i32, i32) {
    %c0_i32 = arith.constant 0 : i32
    %c0_i32_0 = arith.constant 0 : i32
    %c0_i32_1 = arith.constant 0 : i32
    return %c0_i32, %c0_i32_0 : i32, i32
  }
  func.func @transform_4(%arg0: i32) -> (i32, i32) {
    %c0_i32 = arith.constant 0 : i32
    %c0_i32_0 = arith.constant 0 : i32
    %c0_i32_1 = arith.constant 0 : i32
    return %c0_i32, %c0_i32_0 : i32, i32
  }
  func.func @transform_5(%arg0: i32) -> (i32, i32) {
    %c0_i32 = arith.constant 0 : i32
    %c0_i32_0 = arith.constant 0 : i32
    %c0_i32_1 = arith.constant 0 : i32
    return %c0_i32, %c0_i32_0 : i32, i32
  }
  func.func @transform_6(%arg0: i32) -> (i32, i32) {
    %c0_i32 = arith.constant 0 : i32
    %c0_i32_0 = arith.constant 0 : i32
    return %arg0, %c0_i32 : i32, i32
  }
}

</mosaic_0001>

<bundles_post_ra>
// kernel: tpu_custom_call.1
= control target key start
LH: loop header
LB: loop body
LE: loop exit
PB: predicated region body
PF: predicated region fallthrough
CT: control target
= control target key end

     0   :  { %11 = vsyncpa [#allocation3], 0  ;;  %s867_s0 = inlined_call_operand.hbm [shape: f32[2,8], index: 0, kind: input, shape index: {}]   ;;  %s868_s1 = inlined_call_operand.hbm [shape: bf16[8,32], index: 1, kind: input, shape index: {}]   ;;  %s869_s2 = inlined_call_operand.hbm [shape: bf16[2,32,32], index: 2, kind: input, shape index: {}]   ;;  %s870_s3 = inlined_call_operand.hbm [shape: f32[3,32], index: 3, kind: input, shape index: {}]   ;;  %s871_s4 = inlined_call_operand.hbm [shape: bf16[32,1024], index: 4, kind: input, shape index: {}]   ;;  %s872_s5 = inlined_call_operand.hbm [shape: f32[1,1024], index: 5, kind: input, shape index: {}]   ;;  %s873_s6 = inlined_call_operand.hbm [shape: f32[2,1024], index: 6, kind: output, shape index: {}]  }
   0x1   :  { %12 = vsyncpa [#allocation6], 0 }
   0x2   :  { %13 = vsyncpa [#allocation9], 0 }
   0x3   :  { %14 = vsyncpa [#allocation12], 0  ;;  %s32_s23 = sshll.u32 %s868_s1, 4  ;;  %s33_s23 = int_to_ptr.hbm [resolvable:$true] %s32_s23 }
   0x4   :  { %15 = vsyncpa [#allocation4], 0  ;;  %s783_s24 = smov [#allocation5]   ;;  %s56_s28 = sshll.u32 %s870_s3, 4  ;;  %s57_s28 = int_to_ptr.hbm [resolvable:$true] %s56_s28 }
   0x5   :  { %s34_s25 = sshll.u32 %s783_s24, 4  ;;  %s784_s29 = smov [#allocation8]   ;;  %s35_s25 = int_to_ptr.vmem [resolvable:$true] %s34_s25 }
   0x6   :  { %37 = dma.hbm_to_vmem [thread:$0]  %s33_s23, 64, %s35_s25, [#allocation6]  }
   0x7   :  { %s58_s30 = sshll.u32 %s784_s29, 4  ;;  %s21_s9 = sshll.u32 %s867_s0, 4  ;;  %s59_s30 = int_to_ptr.vmem [resolvable:$true] %s58_s30  ;;  %s22_s9 = int_to_ptr.hbm [resolvable:$true] %s21_s9 }
   0x8   :  { %61 = dma.hbm_to_vmem [thread:$0]  %s57_s28, 64, %s59_s30, [#allocation9]  }
   0x9   :  { %s42_s11 = sshll.u32 %s869_s2, 4  ;;  %s785_s12 = smov [#allocation2]   ;;  %s43_s11 = int_to_ptr.hbm [resolvable:$true] %s42_s11 }
   0xa   :  { %s23_s13 = sshll.u32 %s785_s12, 4  ;;  %s786_s3 = smov [#allocation7]   ;;  %s24_s13 = int_to_ptr.vmem [resolvable:$true] %s23_s13 }
   0xb   :  { %26 = dma.hbm_to_vmem [thread:$0]  %s22_s9, 32, %s24_s13, [#allocation3]  }
   0xc   :  { %s44_s14 = sshll.u32 %s786_s3, 4  ;;  %s787_s15 = smov 64   ;;  %s45_s14 = int_to_ptr.vmem [resolvable:$true] %s44_s14 }
   0xd   :  { %s788_s16 = smov 4   ;;  %s66_s18 = sshll.u32 %s871_s4, 4  ;;  %s67_s18 = int_to_ptr.hbm [resolvable:$true] %s66_s18 }
   0xe   :  { %50 = dma.hbm_to_vmem [thread:$0]  %s43_s11, 512, %s45_s14, [#allocation6], %s787_s15, %s787_s15, %s788_s16  }
   0xf   :  { %s789_s19 = smov [#allocation10]   ;;  %s80_s22 = sshll.u32 %s872_s5, 4  ;;  %s81_s22 = int_to_ptr.hbm [resolvable:$true] %s80_s22 }
  0x10   :  { %s68_s20 = sshll.u32 %s789_s19, 4  ;;  %s790_s23 = smov 512   ;;  %s69_s20 = int_to_ptr.vmem [resolvable:$true] %s68_s20 }
  0x11   :  { %s791_s24 = smov 32   ;;  %s792_s25 = smov [#allocation11]  }
  0x12   :  { %74 = dma.hbm_to_vmem [thread:$0]  %s67_s18, 2048, %s69_s20, [#allocation9], %s790_s23, %s790_s23, %s791_s24  }
  0x13   :  { %s82_s26 = sshll.u32 %s792_s25, 4  ;;  %s83_s26 = int_to_ptr.vmem [resolvable:$true] %s82_s26 }
  0x14   :  { %85 = dma.hbm_to_vmem [thread:$0]  %s81_s22, 128, %s83_s26, [#allocation12]  }
  0x15   :  { %773 = dma.done.wait [#allocation3], 32  }
  0x16   :  { %774 = vsyncadd [#allocation3], 4294967264 }
  0x17   :  { %775 = dma.done.wait [#allocation6], 576  }
  0x18   :  { %776 = vsyncadd [#allocation6], 4294966720 }
  0x19   :  { %777 = dma.done.wait [#allocation9], 2112  }
  0x1a   :  { %778 = vsyncadd [#allocation9], 4294965184 }
  0x1b   :  { %779 = dma.done.wait [#allocation12], 128  }
  0x1c   :  { %780 = vsyncadd [#allocation12], 4294967168  ;;  %vm120_vm0 = vcmask 1043456   ;;  %v113_v0 = vld [vmem:[#allocation5] sm:$0xf]  ;;  %vm116_vm1 = vcmask 64512  }
  0x1d   :  { %v111_v1 = vld [vmem:[#allocation2] sm:$0x3]  ;;  %v122_v2 = vsel %vm120_vm0, %v113_v0, 0  ;;  %v572_v4 = vld [vmem:[#allocation7 + $0x8] sm:$0xff]  ;;  %v571_v5 = vld [vmem:[#allocation7] sm:$0xff]  ;;  %vm157_vm2 = vcmask 261120  }
  0x1e   :  { %v112_v3 = vpack.c.bf16 %v111_v1, %v111_v1  ;;  %131 = vmatpush.bf16.msra.mxu0 %v122_v2  ;;  %167 = vmatpush.bf16.msra.mxu1 %v572_v4  ;;  %v602_v6 = vld [vmem:[#allocation8] ss:$0 sm:$0xff]  ;;  %v574_v12 = vld [vmem:[#allocation7 + $0x18] sm:$0xff]  ;;  %v573_v13 = vld [vmem:[#allocation7 + $0x10] sm:$0xff]  ;;  %vm448_vm3 = vcmask 1041408   ;;  %vm450_vm4 = vcmask 1045508  }
  0x1f   :  { %204 = vmatpush.bf16.msra.mxu2 %v574_v12  ;;  %v584_v14 = vld [vmem:[#allocation10 + $0x4c] sm:$0xf]  ;;  %v583_v16 = vld [vmem:[#allocation10 + $0x44] sm:$0xf]  ;;  %v541_v19 = vld [vmem:[#allocation10 + $0x48] sm:$0xf] }
  0x20   :  { %v543_v15 = vld [vmem:[#allocation10 + $0x68] sm:$0xf0]  ;;  %v535_v18 = vld [vmem:[#allocation10 + $0x60] sm:$0xf0]  ;;  %v588_v20 = vld [vmem:[#allocation10 + $0x64] sm:$0xf0] }
  0x21   :  { %480 = vmatmul.msk.bf16.vlgmr.msra.gmra.mxu0 %vm116_vm1, %v112_v3  ;;  %v546_v17 = vor.u32 %v584_v14, %v543_v15  ;;  %v538_v21 = vor.u32 %v583_v16, %v535_v18  ;;  %v542_v22 = vor.u32 %v588_v20, %v541_v19  ;;  %v576_v23 = vld [vmem:[#allocation10 + $0xc] sm:$0xf]  ;;  %v603_v26 = vld [vmem:[#allocation8 + $0x1] ss:$0 sm:$0xff]  ;;  %v533_v32 = vld [vmem:[#allocation10 + $0x40] sm:$0xf] }
  0x22   :  { %168 = vmatpush.bf16.msra.mxu1 %v571_v5  ;;  %v511_v24 = vld [vmem:[#allocation10 + $0x28] sm:$0xf0]  ;;  %v587_v33 = vld [vmem:[#allocation10 + $0x5c] sm:$0xf0]  ;;  %v575_v37 = vld [vmem:[#allocation10 + $0x4] sm:$0xf] }
  0x23   :  { %205 = vmatpush.bf16.msra.mxu2 %v573_v13  ;;  %v514_v25 = vor.u32 %v576_v23, %v511_v24  ;;  %349 = vmatpush.bf16.msrb.mxu0 %v538_v21  ;;  %v534_v34 = vor.u32 %v587_v33, %v533_v32  ;;  %v501_v35 = vld [vmem:[#allocation10] sm:$0xf]  ;;  %v503_v39 = vld [vmem:[#allocation10 + $0x20] sm:$0xf0]  ;;  %v509_v40 = vld [vmem:[#allocation10 + $0x8] sm:$0xf] }
  0x24   :  { %v579_v36 = vld [vmem:[#allocation10 + $0x1c] sm:$0xf0]  ;;  %v580_v41 = vld [vmem:[#allocation10 + $0x24] sm:$0xf0]  ;;  %v506_v42 = vor.u32 %v575_v37, %v503_v39  ;;  %v549_v44 = vld [vmem:[#allocation10 + $0x50] sm:$0xf] }
  0x25   :  { %336 = vmatpush.bf16.msra.mxu3 %v534_v34  ;;  %v502_v38 = vor.u32 %v579_v36, %v501_v35  ;;  %v510_v43 = vor.u32 %v580_v41, %v509_v40  ;;  %v589_v45 = vld [vmem:[#allocation10 + $0x6c] sm:$0xf0]  ;;  %v586_v46 = vld [vmem:[#allocation10 + $0x5c] sm:$0xf]  ;;  %v585_v49 = vld [vmem:[#allocation10 + $0x54] sm:$0xf] }
  0x26   :  { %362 = vmatpush.bf16.msrb.mxu1 %v542_v22  ;;  %v550_v47 = vor.u32 %v589_v45, %v549_v44  ;;  %v559_v48 = vld [vmem:[#allocation10 + $0x78] sm:$0xf0]  ;;  %v551_v50 = vld [vmem:[#allocation10 + $0x70] sm:$0xf0]  ;;  %v557_v53 = vld [vmem:[#allocation10 + $0x58] sm:$0xf] }
  0x27   :  { %375 = vmatpush.bf16.msrb.mxu2 %v546_v17  ;;  %350 = vmatpush.bf16.msrb.mxu0 %v506_v42  ;;  %v562_v51 = vor.u32 %v586_v46, %v559_v48  ;;  %v554_v52 = vor.u32 %v585_v49, %v551_v50  ;;  %v590_v54 = vld [vmem:[#allocation10 + $0x74] sm:$0xf0]  ;;  %v517_v55 = vld [vmem:[#allocation10 + $0x10] sm:$0xf]  ;;  %v578_v58 = vld [vmem:[#allocation10 + $0x1c] sm:$0xf] }
  0x28   :  { %v558_v56 = vor.u32 %v590_v54, %v557_v53  ;;  %v581_v57 = vld [vmem:[#allocation10 + $0x2c] sm:$0xf0]  ;;  %v527_v59 = vld [vmem:[#allocation10 + $0x38] sm:$0xf0]  ;;  %v577_v62 = vld [vmem:[#allocation10 + $0x14] sm:$0xf] }
  0x29   :  { %337 = vmatpush.bf16.msra.mxu3 %v502_v38  ;;  %v518_v60 = vor.u32 %v581_v57, %v517_v55  ;;  %v530_v61 = vor.u32 %v578_v58, %v527_v59  ;;  %v519_v63 = vld [vmem:[#allocation10 + $0x30] sm:$0xf0]  ;;  %v525_v0 = vld [vmem:[#allocation10 + $0x18] sm:$0xf]  ;;  %v604_v4 = vld [vmem:[#allocation8 + $0x2] ss:$0 sm:$0xff] }
  0x2a   :  { %363 = vmatpush.bf16.msrb.mxu1 %v510_v43  ;;  %v522_v1 = vor.u32 %v577_v62, %v519_v63  ;;  %v582_v2 = vld [vmem:[#allocation10 + $0x34] sm:$0xf0]  ;;  %s793_s4 = smov [#allocation13]   ;;  %s467_s29 = sshll.u32 %s873_s6, 4  ;;  %s468_s29 = int_to_ptr.hbm [resolvable:$true] %s467_s29 }
  0x2b   :  { %376 = vmatpush.bf16.msrb.mxu2 %v514_v25  ;;  %401 = vmatpush.bf16.msra.mxu0 %v554_v52  ;;  %v526_v3 = vor.u32 %v582_v2, %v525_v0  ;;  %s465_s5 = sshll.u32 %s793_s4, 4  ;;  %s466_s5 = int_to_ptr.vmem [resolvable:$true] %s465_s5 }
  0x2d   :  { %388 = vmatpush.bf16.msrb.mxu3 %v550_v47 }
  0x2f   :  { %402 = vmatpush.bf16.msra.mxu0 %v522_v1 }
  0x31   :  { %389 = vmatpush.bf16.msrb.mxu3 %v518_v60 }
  0x9e   :  { %v133_v7 = vpop.f32.mrf.mxu0 }
  0x9f   :  { %v134_v8 = vadd.f32 %v602_v6, %v133_v7 }
  0xa1   :  { %v137_v9 = vmax.f32 %v134_v8, 0.0 }
  0xa3   :  { %v138_v10 = vpack.c.bf16 %v137_v9, %v137_v9 }
  0xa5   :  { %489 = vmatmul.msk.bf16.vlgmr.msra.gmra.mxu1 %vm157_vm2, %v138_v10  ;;  %v229_v10 = vld [vmem:[#allocation11] sm:$0xff] }
  0xa6   :  { %v135_v11 = vpop.f32.mrf.mxu0  ;;  %414 = vmatpush.bf16.msra.mxu1 %v558_v56  ;;  %v232_v13 = vperm.slane %v229_v10, 1  ;;  %v233_v14 = vperm.slane %v229_v10, 2  ;;  %v231_v15 = vperm.slane %v229_v10, 0  ;;  %v234_v16 = vperm.slane %v229_v10, 3 }
  0xa7   :  { %v236_v35 = vperm.slane %v229_v10, 5  ;;  %v237_v36 = vperm.slane %v229_v10, 6  ;;  %v235_v37 = vperm.slane %v229_v10, 4  ;;  %v238_v38 = vperm.slane %v229_v10, 7 }
  0xaa   :  { %415 = vmatpush.bf16.msra.mxu1 %v526_v3 }
 0x122   :  { %v170_v27 = vpop.f32.mrf.mxu1 }
 0x123   :  { %v171_v28 = vadd.f32 %v603_v26, %v170_v27 }
 0x125   :  { %v174_v29 = vmax.f32 %v171_v28, 0.0 }
 0x127   :  { %v175_v30 = vpack.c.bf16 %v174_v29, %v174_v29 }
 0x129   :  { %498 = vmatmul.msk.bf16.vlgmr.msra.gmra.mxu2 %vm157_vm2, %v175_v30 }
 0x12a   :  { %v172_v31 = vpop.f32.mrf.mxu1  ;;  %427 = vmatpush.bf16.msra.mxu2 %v562_v51 }
 0x12e   :  { %428 = vmatpush.bf16.msra.mxu2 %v530_v61 }
 0x1ac   :  { %v207_v5 = vpop.f32.mrf.mxu2 }
 0x1ad   :  { %v208_v6 = vadd.f32 %v604_v4, %v207_v5 }
 0x1af   :  { %v211_v7 = vmax.f32 %v208_v6, 0.0 }
 0x1b1   :  { %v212_v8 = vpack.c.bf16 %v211_v7, %v211_v7 }
 0x1b3   :  { %563 = vmatmul.msk.bf16.vlgmr.msra.gmra.mxu3 %vm157_vm2, %v212_v8  ;;  %564 = vmatmul.msk.bf16.vlgmr.msrb.gmra.mxu0 %vm157_vm2, %v212_v8 }
 0x1b4   :  { %565 = vmatmul.msk.bf16.vlgmr.msrb.gmra.mxu1 %vm157_vm2, %v212_v8  ;;  %566 = vmatmul.msk.bf16.vlgmr.msrb.gmra.mxu2 %vm157_vm2, %v212_v8  ;;  %v209_v9 = vpop.f32.mrf.mxu2 }
 0x1c3   :  { %567 = vmatmul.msk.bf16.vlgmr.msrb.gmra.mxu3 %vm157_vm2, %v212_v8  ;;  %568 = vmatmul.msk.bf16.vlgmr.msra.gmra.mxu0 %vm157_vm2, %v212_v8 }
 0x1c4   :  { %569 = vmatmul.msk.bf16.vlgmr.msra.gmra.mxu1 %vm157_vm2, %v212_v8  ;;  %570 = vmatmul.msk.bf16.vlgmr.msra.gmra.mxu2 %vm157_vm2, %v212_v8 }
 0x230   :  { %v352_v11 = vpop.f32.mrf.mxu0 }
 0x231   :  { %v365_v12 = vpop.f32.mrf.mxu1  ;;  %v353_v17 = vadd.f32 %v352_v11, %v232_v13 }
 0x232   :  { %v366_v18 = vadd.f32 %v365_v12, %v233_v14 }
 0x233   :  { %v442_v25 = vrot.slane %v353_v17, 6 }
 0x234   :  { %v443_v26 = vrot.slane %v366_v18, 4 }
 0x236   :  { %v339_v19 = vpop.f32.mrf.mxu3 }
 0x237   :  { %v378_v20 = vpop.f32.mrf.mxu2  ;;  %v340_v21 = vadd.f32 %v339_v19, %v231_v15 }
 0x238   :  { %v379_v22 = vadd.f32 %v378_v20, %v234_v16  ;;  %v354_v23 = vpop.f32.mrf.mxu0 }
 0x239   :  { %v367_v24 = vpop.f32.mrf.mxu1  ;;  %v449_v28 = vsel %vm448_vm3, %v340_v21, %v442_v25 }
 0x23a   :  { %v444_v27 = vrot.slane %v379_v22, 2 }
 0x23c   :  { %v451_v29 = vsel %vm450_vm4, %v443_v26, %v444_v27 }
 0x23d   :  { %v452_v30 = vsel %vm120_vm0, %v449_v28, %v451_v29 }
 0x23e   :  { %v341_v31 = vpop.f32.mrf.mxu3  ;;  %458 = vst [vmem:[#allocation13] sm:$0xff] %v452_v30 }
 0x23f   :  { %v380_v32 = vpop.f32.mrf.mxu2 }
 0x240   :  { %v404_v33 = vpop.f32.mrf.mxu0 }
 0x241   :  { %v417_v34 = vpop.f32.mrf.mxu1  ;;  %v405_v39 = vadd.f32 %v404_v33, %v236_v35 }
 0x242   :  { %v418_v40 = vadd.f32 %v417_v34, %v237_v36 }
 0x243   :  { %v445_v47 = vrot.slane %v405_v39, 6 }
 0x244   :  { %v446_v48 = vrot.slane %v418_v40, 4 }
 0x246   :  { %v391_v41 = vpop.f32.mrf.mxu3 }
 0x247   :  { %v430_v42 = vpop.f32.mrf.mxu2  ;;  %v392_v43 = vadd.f32 %v391_v41, %v235_v37 }
 0x248   :  { %v431_v44 = vadd.f32 %v430_v42, %v238_v38  ;;  %v406_v45 = vpop.f32.mrf.mxu0 }
 0x249   :  { %v419_v46 = vpop.f32.mrf.mxu1  ;;  %v453_v50 = vsel %vm448_vm3, %v392_v43, %v445_v47 }
 0x24a   :  { %v447_v49 = vrot.slane %v431_v44, 2 }
 0x24c   :  { %v454_v51 = vsel %vm450_vm4, %v446_v48, %v447_v49 }
 0x24d   :  { %v455_v52 = vsel %vm120_vm0, %v453_v50, %v454_v51 }
 0x24e   :  { %v393_v53 = vpop.f32.mrf.mxu3  ;;  %459 = vst [vmem:[#allocation13 + $0x8] sm:$0xff] %v455_v52 }
 0x24f   :  { %v432_v54 = vpop.f32.mrf.mxu2  ;;  %470 = dma.vmem_to_hbm [thread:$0]  %s466_s5, 256, %s468_s29, [#allocation4]  }
 0x250   :  { %781 = dma.done.wait [#allocation4], 256  }
 0x251   :  { %782 = vsyncadd [#allocation4], 4294967040 }
 0x252   :  { %475 = vsyncpa [#allocation3], 1 }
 0x253   :  { %476 = vsyncpa [#allocation6], 1 }
 0x254   :  { %477 = vsyncpa [#allocation9], 1 }
 0x255   :  { %478 = vsyncpa [#allocation12], 1 }
 0x256   :  { %479 = vsyncpa [#allocation4], 1 }

</bundles_post_ra>
